<compile_context>
chip_gen: v7x
topology: tpu7x:2x2x1
jax: 0.10.0
libtpu: 0.0.40
codegen_flags: <defaults>
</compile_context>

<pallas_src>
import math

import jax
import jax.numpy as jnp
from jax.experimental import pallas as pl
from jax.experimental.pallas import tpu as pltpu

LANE = 128
SUBLANE = 8
TARGET_TILE_R = 1024   # 1024 * 128 = 128K points per grid step (dense f32)
CHUNK_R = 64           # sublane rows per in-kernel chunk (keeps lifts vreg-resident)
MIN_GRID_STEPS = 4     # keep the grid shardable across v7x's 2 TensorCores


def _cdiv(a, b):
    return -(-a // b)


def _round_up(a, b):
    return _cdiv(a, b) * b


def _choose_tile(batch, r_needed):
    """Pick (tile_r, chunk_r): big tiles to amortize per-step overhead, but keep
    >= MIN_GRID_STEPS grid steps, and make tile_r a multiple of the chunk size."""
    tile_r = min(TARGET_TILE_R, _round_up(r_needed, SUBLANE))
    while tile_r > SUBLANE and batch * _cdiv(r_needed, tile_r) < MIN_GRID_STEPS:
        tile_r = max(SUBLANE, _round_up(tile_r // 2, SUBLANE))
    if tile_r > CHUNK_R:
        tile_r = _round_up(tile_r, CHUNK_R)
    chunk_r = min(CHUNK_R, tile_r)
    return tile_r, chunk_r


def _make_kernel(chunk_r, n_chunks):
    def kernel(params_ref, xy_ref, z_ref, world_ref, depth_ref):
        # Block shapes: xy (1, 2, tile_r, 128), z (1, 1, tile_r, 128),
        # world out (1, 3, tile_r, 128), depth out (1, 1, tile_r, 128).
        # params_ref: whole (B, 20) array in SMEM:
        #   [0:16]  -> composed transform A (row-major 4x4)
        #   [16:20] -> cx, cy, 1/fx, 1/fy
        b = pl.program_id(0)

        a = [params_ref[b, i] for i in range(16)]
        cx = params_ref[b, 16]
        cy = params_ref[b, 17]
        inv_fx = params_ref[b, 18]
        inv_fy = params_ref[b, 19]

        def body(c, carry):
            r0 = pl.multiple_of(c * chunk_r, SUBLANE)
            rows = pl.ds(r0, chunk_r)

            x = xy_ref[0, 0, rows, :]          # (chunk_r, 128)
            y = xy_ref[0, 1, rows, :]
            z = z_ref[0, 0, rows, :]

            # lift(x, y, z) -> camera-space x/y (homogeneous w handled by row consts)
            x_lift = (x - cx) * inv_fx * z
            y_lift = (y - cy) * inv_fy * z

            # Rows 0..2 of A: world = cam2world[0:3, :] @ [x_lift, y_lift, z, 1]
            world_ref[0, 0, rows, :] = a[0] * x_lift + a[1] * y_lift + a[2] * z + a[3]
            world_ref[0, 1, rows, :] = a[4] * x_lift + a[5] * y_lift + a[6] * z + a[7]
            world_ref[0, 2, rows, :] = a[8] * x_lift + a[9] * y_lift + a[10] * z + a[11]
            # Row 3 of A: camera depth = inv(cam2world)[2, :] @ [world; 1], pre-composed.
            # (Analytically [0,0,1,0]; kept for fidelity with the PyTorch round-trip.)
            depth_ref[0, 0, rows, :] = a[12] * x_lift + a[13] * y_lift + a[14] * z + a[15]
            return carry

        jax.lax.fori_loop(0, n_chunks, body, 0, unroll=True)

    return kernel


def depth_sampler(xy, depth, cam2world, intersection_net, intrinsics):
    """Pallas equivalent of DepthSampler.forward (eval mode).

    xy:         (B, N, 2) float32 pixel coords
    depth:      (B, N, 1) float32 depths
    cam2world:  (B, 4, 4) float32
    intersection_net: unused (kept for signature parity with the PyTorch module)
    intrinsics: (B, 4, 4) float32
    Returns (intersections (B, N, 3), depth (B, N, 1)).
    """
    del intersection_net  # not used by the PyTorch forward either
    B, N, _ = xy.shape

    # ---- per-batch glue: inverse + pre-composed 4-row transform -------------
    c2w = cam2world.astype(jnp.float32)
    inv_c2w = jnp.linalg.inv(c2w)                              # torch.inverse equiv
    top = c2w[:, 0:3, :]                                       # (B, 3, 4)
    r = inv_c2w[:, 2, :]                                       # (B, 4) = inv[2, :]
    row3 = jnp.einsum('bj,bjk->bk', r[:, 0:3], top)            # inv[2,0:3] @ c2w[0:3,:]
    row3 = row3.at[:, 3].add(r[:, 3])                          # + inv[2,3] on the w term
    A = jnp.concatenate([top, row3[:, None, :]], axis=1)       # (B, 4, 4)

    intr = intrinsics.astype(jnp.float32)
    fx = intr[:, 0, 0]
    fy = intr[:, 1, 1]
    cx = intr[:, 0, 2]
    cy = intr[:, 1, 2]
    params = jnp.concatenate(
        [A.reshape(B, 16), cx[:, None], cy[:, None],
         (1.0 / fx)[:, None], (1.0 / fy)[:, None]],
        axis=1).astype(jnp.float32)                            # (B, 20)

    # ---- dense (B, C, R, 128) layout + point tiling --------------------------
    r_needed = _cdiv(N, LANE)
    tile_r, chunk_r = _choose_tile(B, r_needed)
    n_tiles = _cdiv(r_needed, tile_r)
    r_pad = n_tiles * tile_r
    n_pad = r_pad * LANE

    # TODO(synk): callers that can produce/consume channel-major (B, C, N) data
    # directly could drop this xy transpose and the world transpose below (they
    # move ~2x the kernel's own HBM bytes); the kernel itself is HBM-bound.
    xy_t = jnp.transpose(xy, (0, 2, 1)).astype(jnp.float32)     # (B, 2, N)
    xy_p = jnp.pad(xy_t, ((0, 0), (0, 0), (0, n_pad - N))).reshape(B, 2, r_pad, LANE)
    z_flat = depth.astype(jnp.float32).reshape(B, N)            # channel dim 1 -> pure reshape
    z_p = jnp.pad(z_flat, ((0, 0), (0, n_pad - N))).reshape(B, 1, r_pad, LANE)

    # Streaming kernel: ~34 VPU flops and 28 bytes of HBM per (padded) point.
    cost = pl.CostEstimate(flops=34 * B * n_pad,
                           transcendentals=0,
                           bytes_accessed=28 * B * n_pad)

    world_t, depth_t = pl.pallas_call(
        _make_kernel(chunk_r, tile_r // chunk_r),
        grid=(B, n_tiles),
        in_specs=[
            pl.BlockSpec(memory_space=pltpu.MemorySpace.SMEM),          # params (B, 20)
            pl.BlockSpec((1, 2, tile_r, LANE), lambda b, t: (b, 0, t, 0)),
            pl.BlockSpec((1, 1, tile_r, LANE), lambda b, t: (b, 0, t, 0)),
        ],
        out_specs=[
            pl.BlockSpec((1, 3, tile_r, LANE), lambda b, t: (b, 0, t, 0)),
            pl.BlockSpec((1, 1, tile_r, LANE), lambda b, t: (b, 0, t, 0)),
        ],
        out_shape=(
            jax.ShapeDtypeStruct((B, 3, r_pad, LANE), jnp.float32),
            jax.ShapeDtypeStruct((B, 1, r_pad, LANE), jnp.float32),
        ),
        compiler_params=pltpu.CompilerParams(
            dimension_semantics=("parallel", "parallel")),
        cost_estimate=cost,
    )(params, xy_p, z_p)

    intersections = jnp.transpose(world_t.reshape(B, 3, n_pad)[:, :, :N], (0, 2, 1))
    depth_out = depth_t.reshape(B, n_pad)[:, :N, None]          # (B, N, 1), no transpose
    # TODO(synk): `if self.training: print(depth.min(), depth.max())` is a
    # training-only side effect; eval-mode semantics implemented here.
    return intersections, depth_out


def _reference(xy, depth, cam2world, intrinsics):
    """Pure-JAX reference matching SRN geometry.world_from_xy_depth / depth_from_world."""
    B, N, _ = xy.shape
    fx = intrinsics[:, 0, 0][:, None]
    fy = intrinsics[:, 1, 1][:, None]
    cx = intrinsics[:, 0, 2][:, None]
    cy = intrinsics[:, 1, 2][:, None]
    x = xy[:, :, 0]
    y = xy[:, :, 1]
    z = depth[:, :, 0]
    x_lift = (x - cx) / fx * z
    y_lift = (y - cy) / fy * z
    pts = jnp.stack([x_lift, y_lift, z, jnp.ones_like(z)], axis=-1)        # (B,N,4)
    world = jnp.einsum('bij,bnj->bni', cam2world, pts)[:, :, :3]           # (B,N,3)
    pts_hom = jnp.concatenate([world, jnp.ones((B, N, 1), jnp.float32)], -1)
    cam = jnp.einsum('bij,bnj->bni', jnp.linalg.inv(cam2world), pts_hom)
    return world, cam[:, :, 2:3]


def _rot_z_c2w(theta, t):
    c, s = math.cos(theta), math.sin(theta)
    return jnp.array([[c, -s, 0.0, t[0]],
                      [s,  c, 0.0, t[1]],
                      [0., 0., 1.0, t[2]],
                      [0., 0., 0.0, 1.0]], dtype=jnp.float32)


def _intrinsics_mat(fx, fy, cx, cy):
    return jnp.array([[fx, 0., cx, 0.],
                      [0., fy, cy, 0.],
                      [0., 0., 1., 0.],
                      [0., 0., 0., 1.]], dtype=jnp.float32)


if __name__ == "__main__":
    key = jax.random.PRNGKey(0)

    cam2world = jnp.stack([
        _rot_z_c2w(0.3, (0.1, -0.2, 0.5)),
        _rot_z_c2w(-0.7, (-0.3, 0.4, 1.0)),
    ], axis=0)                                                  # (B, 4, 4)
    intrinsics = jnp.stack([
        _intrinsics_mat(50.0, 50.0, 8.0, 8.0),
        _intrinsics_mat(48.0, 52.0, 7.5, 8.5),
    ], axis=0)                                                  # (B, 4, 4)

    # Case 1: tiny N (single tile, single chunk) — shapes implied by the module.
    # Case 2: larger N exercising multi-tile grid, multi-chunk inner loop, padded tail.
    for case_i, N in enumerate((8, 20000)):
        B = 2
        key, k_xy, k_d = jax.random.split(key, 3)
        xy = jax.random.uniform(k_xy, (B, N, 2), dtype=jnp.float32) * 16.0
        depth = jax.random.uniform(k_d, (B, N, 1), dtype=jnp.float32) * 2.0 + 0.5

        intersections, depth_cam = depth_sampler(
            xy, depth, cam2world, intersection_net=None, intrinsics=intrinsics)
        jax.block_until_ready((intersections, depth_cam))

        ref_world, ref_depth = _reference(xy, depth, cam2world, intrinsics)
        assert intersections.shape == (B, N, 3)
        assert depth_cam.shape == (B, N, 1)
        assert jnp.allclose(intersections, ref_world, atol=1e-4, rtol=1e-4), case_i
        assert jnp.allclose(depth_cam, ref_depth, atol=1e-4, rtol=1e-4), case_i

    print("KERNEL_OK")
</pallas_src>

<mosaic_0001>
module attributes {stable_mosaic.version = 11 : i64} {
  func.func @kernel(%arg0: i32, %arg1: i32, %arg2: memref<2x20xf32, #tpu.memory_space<smem>>, %arg3: memref<1x2x8x128xf32, #tpu.memory_space<vmem>>, %arg4: memref<1x1x8x128xf32, #tpu.memory_space<vmem>>, %arg5: memref<1x3x8x128xf32, #tpu.memory_space<vmem>>, %arg6: memref<1x1x8x128xf32, #tpu.memory_space<vmem>>) attributes {dimension_semantics = [#tpu.dimension_semantics<parallel>, #tpu.dimension_semantics<parallel>], iteration_bounds = array<i64: 2, 1>, scalar_prefetch = 0 : i64, scratch_operands = 0 : i64, tpu.core_type = #tpu.core_type<tc>, window_params = [{transform_indices = @transform_0, window_bounds = array<i64: 2, 20>}, {transform_indices = @transform_1, window_bounds = array<i64: 1, 2, 8, 128>}, {transform_indices = @transform_2, window_bounds = array<i64: 1, 1, 8, 128>}, {transform_indices = @transform_3, window_bounds = array<i64: 1, 3, 8, 128>}, {transform_indices = @transform_4, window_bounds = array<i64: 1, 1, 8, 128>}]} {
    %0 = arith.index_cast %arg0 : i32 to index
    %c0 = arith.constant 0 : index
    %1 = memref.load %arg2[%0, %c0] : memref<2x20xf32, #tpu.memory_space<smem>>
    %2 = arith.index_cast %arg0 : i32 to index
    %c1 = arith.constant 1 : index
    %3 = memref.load %arg2[%2, %c1] : memref<2x20xf32, #tpu.memory_space<smem>>
    %4 = arith.index_cast %arg0 : i32 to index
    %c2 = arith.constant 2 : index
    %5 = memref.load %arg2[%4, %c2] : memref<2x20xf32, #tpu.memory_space<smem>>
    %6 = arith.index_cast %arg0 : i32 to index
    %c3 = arith.constant 3 : index
    %7 = memref.load %arg2[%6, %c3] : memref<2x20xf32, #tpu.memory_space<smem>>
    %8 = arith.index_cast %arg0 : i32 to index
    %c4 = arith.constant 4 : index
    %9 = memref.load %arg2[%8, %c4] : memref<2x20xf32, #tpu.memory_space<smem>>
    %10 = arith.index_cast %arg0 : i32 to index
    %c5 = arith.constant 5 : index
    %11 = memref.load %arg2[%10, %c5] : memref<2x20xf32, #tpu.memory_space<smem>>
    %12 = arith.index_cast %arg0 : i32 to index
    %c6 = arith.constant 6 : index
    %13 = memref.load %arg2[%12, %c6] : memref<2x20xf32, #tpu.memory_space<smem>>
    %14 = arith.index_cast %arg0 : i32 to index
    %c7 = arith.constant 7 : index
    %15 = memref.load %arg2[%14, %c7] : memref<2x20xf32, #tpu.memory_space<smem>>
    %16 = arith.index_cast %arg0 : i32 to index
    %c8 = arith.constant 8 : index
    %17 = memref.load %arg2[%16, %c8] : memref<2x20xf32, #tpu.memory_space<smem>>
    %18 = arith.index_cast %arg0 : i32 to index
    %c9 = arith.constant 9 : index
    %19 = memref.load %arg2[%18, %c9] : memref<2x20xf32, #tpu.memory_space<smem>>
    %20 = arith.index_cast %arg0 : i32 to index
    %c10 = arith.constant 10 : index
    %21 = memref.load %arg2[%20, %c10] : memref<2x20xf32, #tpu.memory_space<smem>>
    %22 = arith.index_cast %arg0 : i32 to index
    %c11 = arith.constant 11 : index
    %23 = memref.load %arg2[%22, %c11] : memref<2x20xf32, #tpu.memory_space<smem>>
    %24 = arith.index_cast %arg0 : i32 to index
    %c12 = arith.constant 12 : index
    %25 = memref.load %arg2[%24, %c12] : memref<2x20xf32, #tpu.memory_space<smem>>
    %26 = arith.index_cast %arg0 : i32 to index
    %c13 = arith.constant 13 : index
    %27 = memref.load %arg2[%26, %c13] : memref<2x20xf32, #tpu.memory_space<smem>>
    %28 = arith.index_cast %arg0 : i32 to index
    %c14 = arith.constant 14 : index
    %29 = memref.load %arg2[%28, %c14] : memref<2x20xf32, #tpu.memory_space<smem>>
    %30 = arith.index_cast %arg0 : i32 to index
    %c15 = arith.constant 15 : index
    %31 = memref.load %arg2[%30, %c15] : memref<2x20xf32, #tpu.memory_space<smem>>
    %32 = arith.index_cast %arg0 : i32 to index
    %c16 = arith.constant 16 : index
    %33 = memref.load %arg2[%32, %c16] : memref<2x20xf32, #tpu.memory_space<smem>>
    %34 = arith.index_cast %arg0 : i32 to index
    %c17 = arith.constant 17 : index
    %35 = memref.load %arg2[%34, %c17] : memref<2x20xf32, #tpu.memory_space<smem>>
    %36 = arith.index_cast %arg0 : i32 to index
    %c18 = arith.constant 18 : index
    %37 = memref.load %arg2[%36, %c18] : memref<2x20xf32, #tpu.memory_space<smem>>
    %38 = arith.index_cast %arg0 : i32 to index
    %c19 = arith.constant 19 : index
    %39 = memref.load %arg2[%38, %c19] : memref<2x20xf32, #tpu.memory_space<smem>>
    %c0_i32 = arith.constant 0 : i32
    %c8_i32 = arith.constant 8 : i32
    %40 = arith.muli %c0_i32, %c8_i32 : i32
    %41 = tpu.assume_multiple %40, 8 : i32
    %c0_0 = arith.constant 0 : index
    %c0_1 = arith.constant 0 : index
    %42 = arith.index_cast %41 : i32 to index
    %c0_2 = arith.constant 0 : index
    %43 = vector.load %arg3[%c0_0, %c0_1, %42, %c0_2] : memref<1x2x8x128xf32, #tpu.memory_space<vmem>>, vector<1x1x8x128xf32>
    %44 = vector.shape_cast %43 : vector<1x1x8x128xf32> to vector<8x128xf32>
    %c0_3 = arith.constant 0 : index
    %c1_4 = arith.constant 1 : index
    %45 = arith.index_cast %41 : i32 to index
    %c0_5 = arith.constant 0 : index
    %46 = vector.load %arg3[%c0_3, %c1_4, %45, %c0_5] : memref<1x2x8x128xf32, #tpu.memory_space<vmem>>, vector<1x1x8x128xf32>
    %47 = vector.shape_cast %46 : vector<1x1x8x128xf32> to vector<8x128xf32>
    %c0_6 = arith.constant 0 : index
    %c0_7 = arith.constant 0 : index
    %48 = arith.index_cast %41 : i32 to index
    %c0_8 = arith.constant 0 : index
    %49 = vector.load %arg4[%c0_6, %c0_7, %48, %c0_8] : memref<1x1x8x128xf32, #tpu.memory_space<vmem>>, vector<1x1x8x128xf32>
    %50 = vector.shape_cast %49 : vector<1x1x8x128xf32> to vector<8x128xf32>
    %51 = vector.broadcast %33 : f32 to vector<8x128xf32>
    %52 = arith.subf %44, %51 : vector<8x128xf32>
    %53 = vector.broadcast %37 : f32 to vector<8x128xf32>
    %54 = arith.mulf %52, %53 : vector<8x128xf32>
    %55 = arith.mulf %54, %50 : vector<8x128xf32>
    %56 = vector.broadcast %35 : f32 to vector<8x128xf32>
    %57 = arith.subf %47, %56 : vector<8x128xf32>
    %58 = vector.broadcast %39 : f32 to vector<8x128xf32>
    %59 = arith.mulf %57, %58 : vector<8x128xf32>
    %60 = arith.mulf %59, %50 : vector<8x128xf32>
    %61 = vector.broadcast %1 : f32 to vector<8x128xf32>
    %62 = arith.mulf %61, %55 : vector<8x128xf32>
    %63 = vector.broadcast %3 : f32 to vector<8x128xf32>
    %64 = arith.mulf %63, %60 : vector<8x128xf32>
    %65 = arith.addf %62, %64 : vector<8x128xf32>
    %66 = vector.broadcast %5 : f32 to vector<8x128xf32>
    %67 = arith.mulf %66, %50 : vector<8x128xf32>
    %68 = arith.addf %65, %67 : vector<8x128xf32>
    %69 = vector.broadcast %7 : f32 to vector<8x128xf32>
    %70 = arith.addf %68, %69 : vector<8x128xf32>
    %c0_9 = arith.constant 0 : index
    %c0_10 = arith.constant 0 : index
    %71 = arith.index_cast %41 : i32 to index
    %c0_11 = arith.constant 0 : index
    %72 = vector.load %arg5[%c0_9, %c0_10, %71, %c0_11] : memref<1x3x8x128xf32, #tpu.memory_space<vmem>>, vector<1x1x8x128xf32>
    %73 = vector.shape_cast %72 : vector<1x1x8x128xf32> to vector<8x128xf32>
    %74 = vector.shape_cast %70 : vector<8x128xf32> to vector<1x1x8x128xf32>
    tpu.vector_store %arg5[%c0_9, %c0_10, %71, %c0_11], %74 {strides = array<i32>} : memref<1x3x8x128xf32, #tpu.memory_space<vmem>>, vector<1x1x8x128xf32>,
    %75 = vector.broadcast %9 : f32 to vector<8x128xf32>
    %76 = arith.mulf %75, %55 : vector<8x128xf32>
    %77 = vector.broadcast %11 : f32 to vector<8x128xf32>
    %78 = arith.mulf %77, %60 : vector<8x128xf32>
    %79 = arith.addf %76, %78 : vector<8x128xf32>
    %80 = vector.broadcast %13 : f32 to vector<8x128xf32>
    %81 = arith.mulf %80, %50 : vector<8x128xf32>
    %82 = arith.addf %79, %81 : vector<8x128xf32>
    %83 = vector.broadcast %15 : f32 to vector<8x128xf32>
    %84 = arith.addf %82, %83 : vector<8x128xf32>
    %c0_12 = arith.constant 0 : index
    %c1_13 = arith.constant 1 : index
    %85 = arith.index_cast %41 : i32 to index
    %c0_14 = arith.constant 0 : index
    %86 = vector.load %arg5[%c0_12, %c1_13, %85, %c0_14] : memref<1x3x8x128xf32, #tpu.memory_space<vmem>>, vector<1x1x8x128xf32>
    %87 = vector.shape_cast %86 : vector<1x1x8x128xf32> to vector<8x128xf32>
    %88 = vector.shape_cast %84 : vector<8x128xf32> to vector<1x1x8x128xf32>
    tpu.vector_store %arg5[%c0_12, %c1_13, %85, %c0_14], %88 {strides = array<i32>} : memref<1x3x8x128xf32, #tpu.memory_space<vmem>>, vector<1x1x8x128xf32>,
    %89 = vector.broadcast %17 : f32 to vector<8x128xf32>
    %90 = arith.mulf %89, %55 : vector<8x128xf32>
    %91 = vector.broadcast %19 : f32 to vector<8x128xf32>
    %92 = arith.mulf %91, %60 : vector<8x128xf32>
    %93 = arith.addf %90, %92 : vector<8x128xf32>
    %94 = vector.broadcast %21 : f32 to vector<8x128xf32>
    %95 = arith.mulf %94, %50 : vector<8x128xf32>
    %96 = arith.addf %93, %95 : vector<8x128xf32>
    %97 = vector.broadcast %23 : f32 to vector<8x128xf32>
    %98 = arith.addf %96, %97 : vector<8x128xf32>
    %c0_15 = arith.constant 0 : index
    %c2_16 = arith.constant 2 : index
    %99 = arith.index_cast %41 : i32 to index
    %c0_17 = arith.constant 0 : index
    %100 = vector.load %arg5[%c0_15, %c2_16, %99, %c0_17] : memref<1x3x8x128xf32, #tpu.memory_space<vmem>>, vector<1x1x8x128xf32>
    %101 = vector.shape_cast %100 : vector<1x1x8x128xf32> to vector<8x128xf32>
    %102 = vector.shape_cast %98 : vector<8x128xf32> to vector<1x1x8x128xf32>
    tpu.vector_store %arg5[%c0_15, %c2_16, %99, %c0_17], %102 {strides = array<i32>} : memref<1x3x8x128xf32, #tpu.memory_space<vmem>>, vector<1x1x8x128xf32>,
    %103 = vector.broadcast %25 : f32 to vector<8x128xf32>
    %104 = arith.mulf %103, %55 : vector<8x128xf32>
    %105 = vector.broadcast %27 : f32 to vector<8x128xf32>
    %106 = arith.mulf %105, %60 : vector<8x128xf32>
    %107 = arith.addf %104, %106 : vector<8x128xf32>
    %108 = vector.broadcast %29 : f32 to vector<8x128xf32>
    %109 = arith.mulf %108, %50 : vector<8x128xf32>
    %110 = arith.addf %107, %109 : vector<8x128xf32>
    %111 = vector.broadcast %31 : f32 to vector<8x128xf32>
    %112 = arith.addf %110, %111 : vector<8x128xf32>
    %c0_18 = arith.constant 0 : index
    %c0_19 = arith.constant 0 : index
    %113 = arith.index_cast %41 : i32 to index
    %c0_20 = arith.constant 0 : index
    %114 = vector.load %arg6[%c0_18, %c0_19, %113, %c0_20] : memref<1x1x8x128xf32, #tpu.memory_space<vmem>>, vector<1x1x8x128xf32>
    %115 = vector.shape_cast %114 : vector<1x1x8x128xf32> to vector<8x128xf32>
    %116 = vector.shape_cast %112 : vector<8x128xf32> to vector<1x1x8x128xf32>
    tpu.vector_store %arg6[%c0_18, %c0_19, %113, %c0_20], %116 {strides = array<i32>} : memref<1x1x8x128xf32, #tpu.memory_space<vmem>>, vector<1x1x8x128xf32>,
    %c1_i32 = arith.constant 1 : i32
    return
  }
  func.func @transform_0(%arg0: i32, %arg1: i32) -> (i32, i32) {
    %c0_i32 = arith.constant 0 : i32
    %c0_i32_0 = arith.constant 0 : i32
    %c0_i32_1 = arith.constant 0 : i32
    return %c0_i32, %c0_i32_0 : i32, i32
  }
  func.func @transform_1(%arg0: i32, %arg1: i32) -> (i32, i32, i32, i32) {
    %c0_i32 = arith.constant 0 : i32
    %c0_i32_0 = arith.constant 0 : i32
    %c0_i32_1 = arith.constant 0 : i32
    return %arg0, %c0_i32, %arg1, %c0_i32_0 : i32, i32, i32, i32
  }
  func.func @transform_2(%arg0: i32, %arg1: i32) -> (i32, i32, i32, i32) {
    %c0_i32 = arith.constant 0 : i32
    %c0_i32_0 = arith.constant 0 : i32
    %c0_i32_1 = arith.constant 0 : i32
    return %arg0, %c0_i32, %arg1, %c0_i32_0 : i32, i32, i32, i32
  }
  func.func @transform_3(%arg0: i32, %arg1: i32) -> (i32, i32, i32, i32) {
    %c0_i32 = arith.constant 0 : i32
    %c0_i32_0 = arith.constant 0 : i32
    %c0_i32_1 = arith.constant 0 : i32
    return %arg0, %c0_i32, %arg1, %c0_i32_0 : i32, i32, i32, i32
  }
  func.func @transform_4(%arg0: i32, %arg1: i32) -> (i32, i32, i32, i32) {
    %c0_i32 = arith.constant 0 : i32
    %c0_i32_0 = arith.constant 0 : i32
    %c0_i32_1 = arith.constant 0 : i32
    return %arg0, %c0_i32, %arg1, %c0_i32_0 : i32, i32, i32, i32
  }
}

</mosaic_0001>

<bundles_post_ra>
// kernel: tpu_custom_call.1
= control target key start
LH: loop header
LB: loop body
LE: loop exit
PB: predicated region body
PF: predicated region fallthrough
CT: control target
= control target key end

     0   :  { %s1287_s0 = inlined_call_operand.hbm [shape: f32[2,20], index: 0, kind: input, shape index: {}]   ;;  %s1288_s1 = inlined_call_operand.hbm [shape: f32[2,2,8,128], index: 1, kind: input, shape index: {}]   ;;  %s1289_s2 = inlined_call_operand.hbm [shape: f32[2,1,8,128], index: 2, kind: input, shape index: {}]   ;;  %s1290_s3 = inlined_call_operand.hbm [shape: f32[2,3,8,128], index: 3, kind: output, shape index: {0}]   ;;  %s1291_s4 = inlined_call_operand.hbm [shape: f32[2,1,8,128], index: 4, kind: output, shape index: {1}]  }
   0x1   :  { %1300 = sst [smem:[#allocation20_spill]] %s1287_s0 }
   0x2   :  { %1301 = sst [smem:[#allocation21_spill]] %s1288_s1 }
   0x3   :  { %1302 = sst [smem:[#allocation22_spill]] %s1289_s2 }
   0x4   :  { %10 = vsyncpa [#allocation5], 0 }
   0x5   :  { %11 = vsyncpa [#allocation3], 0 }
   0x6   :  { %13 = vsyncpa [#allocation3 + $0x1], 0 }
   0x7   :  { %14 = vsyncpa [#allocation8], 0 }
   0x8   :  { %16 = vsyncpa [#allocation8 + $0x1], 0 }
   0x9   :  { %17 = vsyncpa [#allocation4], 0 }
   0xa   :  { %19 = vsyncpa [#allocation4 + $0x1], 0 }
   0xb   :  { %20 = vsyncpa [#allocation11], 0 }
   0xc   :  { %22 = vsyncpa [#allocation11 + $0x1], 0  ;;  %s936_s15 = smov 0   ;;  %s938_s16 = smov 0  }
   0xd   :  { %s940_s17 = smov 0   ;;  %s942_s18 = smov 0  }
   0xe   :  { %s944_s19 = smov 0   ;;  %s946_s20 = smov 0  }
   0xf LB: > { %1303 = sst [smem:[#allocation17_spill]] %s896_s19  ;;  %s591_s21 = sadd.s32 4294967295, %s900_s20   ;;  %s900_s20 = sphi %s946_s20, %s28_s20   ;;  %s896_s19 = sphi %s944_s19, %s1324_s19   ;;  %s892_s18 = sphi %s942_s18, %s1323_s18   ;;  %s888_s17 = sphi %s940_s17, %s1327_s17   ;;  %s884_s16 = sphi %s938_s16, %s1326_s16   ;;  %s880_s15 = sphi %s936_s15, %s1325_s15  }
  0x10   : > { %s592_s22 = sadd.s32 4294967294, %s900_s20   ;;  %s70_s23 = sadd.s32 1, %s888_s17 }
  0x11   : > { %p77_p0 = scmp.ne.s32.totalorder %s888_s17, %s884_s16  ;;  %p78_p1 = scmp.eq.s32.totalorder %s900_s20, 0 }
  0x12   : > { %p83_p2 = scmp.ne.s32.totalorder %s884_s16, %s880_s15  ;;  %p974_p3 = scmp.eq.s32.totalorder %s591_s21, 0 }
  0x13   : > { %p137_p4 = scmp.eq.s32.totalorder %s591_s21, 1  ;;  %p79_p5 = por %p78_p1, %p77_p0 }
  0x14   : > { %s1304_s24 = scalar_select %p974_p3, 1, 0 }
  0x15   : > { %p143_p6 = scmp.eq.s32.totalorder %s592_s22, 1  ;;  %p980_p7 = por %p974_p3, %p83_p2 }
  0x16   : > { %p984_p8 = por %p137_p4, %p77_p0  ;;  %p593_p10 = scmp.ge.s32.totalorder %s900_s20, 1 }
  0x17   : > { %s1305_s25 = scalar_select %p980_p7, 1, 0 }
  0x18   : > { %s1306_s26 = scalar_select %p984_p8, 1, 0 }
  0x19   : > { %p988_p9 = por %p143_p6, %p83_p2  ;;  %p178_p11 = scmp.lt.s32.totalorder %s900_s20, 3 }
  0x1a   : > { %p649_p1 = scmp.lt.s32.totalorder %s900_s20, 2  ;;  %s1001_s29 = sand.u32 1, %s888_s17  }
  0x1b   : > { %s1307_s27 = scalar_select %p988_p9, 1, 0 }
  0x1c   : > { %p995_p13 = pnand %p593_p10, %p178_p11  ;;  %p1005_p4 = pnand %p649_p1, %p79_p5 }
  0x1d   : > { %s40_s5 = sadd.s32 1, %s896_s19  ;;  %s596_s6 = sshll.u32 %s1001_s29, 4 }
  0x1e   : > { %s1308_s28 = scalar_select %p995_p13, 1, 0 }
  0x1f   : > { %p630_p0 = pneg %p995_p13  ;;  %p42_p6 = scmp.ge.s32.totalorder %s40_s5, 2 }
  0x20   : > { %s1310_s0 = sld [smem:[#allocation20_spill]] }
  0x21   : > { %p631_p2 = pnand %p630_p0, %p974_p3 }
  0x23   : > { %p707_p11 = pneg %p631_p2 }
  0x26   : > { %s705_s9 = scalar_lea.hbm %s1310_s0, 32 }
  0x27   : > { %p706_p10 = scmp.ne.s32.totalorder %s1310_s0, %s705_s9  ;;  %p712_p5 = scmp.lt.u32.totalorder %s705_s9, %s1310_s0 }
  0x29   : > { %p708_p12 = pnand %p707_p11, %p706_p10 }
  0x2b   : > { %p709_p9 = pneg %p708_p12 }
  0x2d   : > { %p714_p1 = pnand %p712_p5, %p709_p9 }
  0x2f   : > { %717 = shalt.err (!%p714_p1)
}
  0x30   : > { %s902_s14 = smov [#allocation2]   ;;  %s1329_s5 = smov (%p42_p6, %s40_s5), 0 }
  0x31   : > { %633 = dma.hbm_to_smem (!%p631_p2), %s1310_s0, 32, %s902_s14, [#allocation5]  }
  0x32   : > { %1311 = sst [smem:[#allocation18_spill]] %s1329_s5  ;;  %s615_s7 = sshll.u32 %s896_s19, 8 }
  0x33   : > { %s65_s8 = ssub.s32 %s896_s19, %s1329_s5  ;;  %s1312_s1 = sld [smem:[#allocation21_spill]] }
  0x34   : > { %p68_p9 = scmp.eq.s32.totalorder %s65_s8, 0  ;;  %s204_s12 = scalar_lea.vmem [#allocation6], %s596_s6 }
  0x35   : > { %s212_s13 = sshll.u32 %s204_s12, 4  ;;  %s201_s21 = scalar_lea.sflag [#allocation3], %s1001_s29  ;;  %s1035_s13 = int_to_ptr.vmem [resolvable:$true] %s212_s13 }
  0x36   : > { %s1040_s14 = scalar_select %p68_p9, %s888_s17, %s70_s23  }
  0x37   : > { %p720_p0 = pneg %p1005_p4 }
  0x38   : > { %1313 = sst [smem:[#allocation19_spill]] %s1040_s14 }
  0x39   : > { %s1033_s11 = scalar_lea.hbm %s1312_s1, %s615_s7  ;;  %s723_s8 = scalar_lea.hbm %s1312_s1, 512 }
  0x3a   : > { %s718_s22 = scalar_lea.hbm %s1033_s11, 256  ;;  %p724_p10 = scmp.lt.u32.totalorder %s1033_s11, %s1312_s1 }
  0x3b   : > { %p719_p12 = scmp.ne.s32.totalorder %s1033_s11, %s718_s22  ;;  %p725_p11 = scmp.lt.u32.totalorder %s723_s8, %s718_s22 }
  0x3c   : > { %p727_p1 = scmp.lt.u32.totalorder %s718_s22, %s1033_s11 }
  0x3d   : > { %p721_p2 = pnand %p720_p0, %p719_p12  ;;  %p726_p5 = por %p725_p11, %p724_p10 }
  0x3f   : > { %p722_p6 = pneg %p721_p2  ;;  %p728_p9 = por %p727_p1, %p726_p5 }
  0x41   : > { %p729_p8 = pnand %p728_p9, %p722_p6 }
  0x43   : > { %732 = shalt.err (!%p729_p8)
}
  0x44   : > { %s733_s23 = scalar_lea.vmem %s1035_s13, 256  ;;  %s903_s12 = smov [#allocation6]  }
  0x45   : > { %p734_p12 = scmp.ne.s32.totalorder %s1035_s13, %s733_s23  ;;  %s738_s7 = sshll.u32 %s903_s12, 4  ;;  %s739_s7 = int_to_ptr.vmem [resolvable:$false] %s738_s7 }
  0x46   : > { %s740_s9 = scalar_lea.vmem %s739_s7, 512  ;;  %p741_p3 = scmp.lt.s32.totalorder %s1035_s13, %s739_s7 }
  0x47   : > { %p736_p2 = pnand %p734_p12, %p720_p0  ;;  %p742_p10 = scmp.lt.s32.totalorder %s740_s9, %s733_s23 }
  0x49   : > { %p737_p7 = pneg %p736_p2  ;;  %p743_p11 = por %p742_p10, %p741_p3 }
  0x4b   : > { %p744_p5 = pnand %p743_p11, %p737_p7 }
  0x4d   : > { %747 = shalt.err (!%p744_p5)
}
  0x4e   : > { %s904_s22 = smov 128   ;;  %s905_s8 = smov 8  }
  0x4f   : > { %637 = dma.hbm_to_vmem [thread:$0]  (!%p1005_p4), %s1033_s11, 256, %s1035_s13, %s201_s21, %s904_s22, %s904_s22, %s905_s8  }
  0x50   : > { %s599_s6 = sshll.u32 %s1001_s29, 3  ;;  %s600_s10 = sshll.u32 %s896_s19, 7 }
  0x51   : > { %s1314_s2 = sld [smem:[#allocation22_spill]]  ;;  %s226_s9 = scalar_lea.vmem [#allocation7], %s599_s6 }
  0x52   : > { %s234_s0 = sshll.u32 %s226_s9, 4  ;;  %s223_s1 = scalar_lea.sflag [#allocation8], %s1001_s29  ;;  %s235_s0 = int_to_ptr.vmem [resolvable:$true] %s234_s0 }
  0x57   : > { %s1075_s7 = scalar_lea.hbm %s1314_s2, %s600_s10  ;;  %s753_s21 = scalar_lea.hbm %s1314_s2, 256 }
  0x58   : > { %s748_s5 = scalar_lea.hbm %s1075_s7, 128  ;;  %p754_p6 = scmp.lt.u32.totalorder %s1075_s7, %s1314_s2 }
  0x59   : > { %p749_p3 = scmp.ne.s32.totalorder %s1075_s7, %s748_s5  ;;  %p755_p1 = scmp.lt.u32.totalorder %s753_s21, %s748_s5 }
  0x5a   : > { %p757_p12 = scmp.lt.u32.totalorder %s748_s5, %s1075_s7 }
  0x5b   : > { %p751_p7 = pnand %p749_p3, %p720_p0  ;;  %p756_p9 = por %p755_p1, %p754_p6 }
  0x5d   : > { %p752_p8 = pneg %p751_p7  ;;  %p758_p2 = por %p757_p12, %p756_p9 }
  0x5f   : > { %p759_p10 = pnand %p758_p2, %p752_p8 }
  0x61   : > { %762 = shalt.err (!%p759_p10)
}
  0x62   : > { %s763_s29 = scalar_lea.vmem %s235_s0, 128  ;;  %s906_s6 = smov [#allocation7]  }
  0x63   : > { %p764_p11 = scmp.ne.s32.totalorder %s235_s0, %s763_s29  ;;  %s768_s10 = sshll.u32 %s906_s6, 4  ;;  %s769_s10 = int_to_ptr.vmem [resolvable:$false] %s768_s10 }
  0x64   : > { %s770_s12 = scalar_lea.vmem %s769_s10, 256  ;;  %p771_p7 = scmp.lt.s32.totalorder %s235_s0, %s769_s10 }
  0x65   : > { %p766_p5 = pnand %p764_p11, %p720_p0  ;;  %p772_p13 = scmp.lt.s32.totalorder %s770_s12, %s763_s29 }
  0x67   : > { %p767_p3 = pneg %p766_p5  ;;  %p773_p1 = por %p772_p13, %p771_p7 }
  0x69   : > { %p774_p6 = pnand %p773_p1, %p767_p3 }
  0x6b   : > { %777 = shalt.err (!%p774_p6)
}
  0x6c   : > { %640 = dma.hbm_to_vmem [thread:$0]  (!%p1005_p4), %s1075_s7, 128, %s235_s0, %s223_s1  }
  0x6d   : > { %p1315_p8 = scmp.ne.s32.totalorder %s1308_s28, 0 }
  0x6e   : > { %p1316_p9 = scmp.ne.s32.totalorder (!%p1315_p8), %s1304_s24, 0 }
  0x6f   : > { %243 = sbr.rel (%p1315_p8) target bundleno = 200 (0xc8), region = 32 }
  0x76   : > { %859 = dma.done.wait (%p1316_p9), [#allocation5], 32  }
  0x77   : > { %861 = vsyncadd (%p1316_p9), [#allocation5], 4294967264  ;;  %s1104_s5 = sand.u32 1, %s884_s16   ;;  %p1317_p13 = scmp.ne.s32.totalorder %s1305_s25, 0 }
  0x78   : > { %s603_s23 = sshll.u32 %s1104_s5, 4  ;;  %s250_s9 = scalar_lea.sflag [#allocation3], %s1104_s5 }
  0x79   : > { %s253_s30 = scalar_lea.vmem [#allocation6], %s603_s23 }
  0x7a   : > { %863 = dma.done.wait (%p1317_p13), %s250_s9, 256  }
  0x7b   : > { %865 = vsyncadd (%p1317_p13), %s250_s9, 4294967040  ;;  %s1298_s0 = sshll.u32 %s1104_s5, 3  ;;  %s259_s1 = scalar_lea.sflag [#allocation8], %s1104_s5 }
  0x7c   : > { %s1116_s24 = scalar_lea.vmem [#allocation7], %s1298_s0 }
  0x7d   : > { %867 = dma.done.wait (%p1317_p13), %s259_s1, 128  }
  0x7e   : > { %869 = vsyncadd (%p1317_p13), %s259_s1, 4294967168 }
  0x7f   : > { %267 = sfence }
  0x80   : > { %s1123_s28 = sshll.u32 %s892_s18, 7  ;;  %s616_s0 = smul.u32 24, %s1104_s5  ;;  %v338_v0 = vld [vmem:[%s253_s30] sm:$0xff]  ;;  %v607_v1 = vld [vmem:[%s253_s30 + $0x8] sm:$0xff] }
  0x81   : > { %s300_s7 = sadd.s32 1, %s1123_s28  ;;  %s1127_s11 = sld [smem:[#allocation2 + %s1123_s28]]  ;;  %v1154_v6 = vld [vmem:[%s1116_s24] sm:$0xff] }
  0x82   : > { %s1129_s13 = sld [smem:[#allocation2 + %s300_s7]]  ;;  %s302_s25 = sadd.s32 2, %s1123_s28 }
  0x83   : > { %s1132_s21 = sld [smem:[#allocation2 + %s302_s25]]  ;;  %s304_s22 = sadd.s32 3, %s1123_s28 }
  0x84   : > { %s330_s8 = sadd.s32 16, %s1123_s28  ;;  %s332_s29 = sadd.s32 17, %s1123_s28 }
  0x85   : > { %s331_s6 = sld [smem:[#allocation2 + %s330_s8]]  ;;  %s334_s12 = sadd.s32 18, %s1123_s28 }
  0x86   : > { %s333_s10 = sld [smem:[#allocation2 + %s332_s29]]  ;;  %s336_s23 = sadd.s32 19, %s1123_s28 }
  0x87   : > { %s335_s9 = sld [smem:[#allocation2 + %s334_s12]]  ;;  %s306_s7 = sadd.s32 4, %s1123_s28  ;;  %v353_v12 = vstv %s1127_s11 }
  0x88   : > { %s337_s1 = sld [smem:[#allocation2 + %s336_s23]]  ;;  %s308_s19 = sadd.s32 5, %s1123_s28  ;;  %v355_v13 = vstv %s1129_s13 }
  0x89   : > { %s1141_s2 = sld [smem:[#allocation2 + %s304_s22]]  ;;  %s310_s14 = sadd.s32 6, %s1123_s28  ;;  %v358_v11 = vstv %s1132_s21 }
  0x8a   : > { %s1143_s25 = sld [smem:[#allocation2 + %s306_s7]]  ;;  %s312_s22 = sadd.s32 7, %s1123_s28  ;;  %v359_v17 = vmul.f32 %v358_v11, %v1154_v6 }
  0x8b   : > { %v343_v2 = vstv %s331_s6  ;;  %s1147_s8 = sld [smem:[#allocation2 + %s308_s19]]  ;;  %s314_s30 = sadd.s32 8, %s1123_s28 }
  0x8c   : > { %v348_v3 = vstv %s333_s10  ;;  %s1149_s29 = sld [smem:[#allocation2 + %s310_s14]]  ;;  %v344_v4 = vsub.f32 %v338_v0, %v343_v2  ;;  %s316_s19 = sadd.s32 9, %s1123_s28 }
  0x8d   : > { %v349_v5 = vsub.f32 %v607_v1, %v348_v3  ;;  %v345_v7 = vstv %s335_s9  ;;  %s1156_s6 = sld [smem:[#allocation2 + %s312_s22]]  ;;  %s318_s14 = sadd.s32 10, %s1123_s28 }
  0x8e   : > { %v350_v8 = vstv %s337_s1  ;;  %s1158_s10 = sld [smem:[#allocation2 + %s314_s30]]  ;;  %v346_v9 = vmul.f32 %v345_v7, %v344_v4  ;;  %s320_s23 = sadd.s32 11, %s1123_s28 }
  0x8f   : > { %v351_v10 = vmul.f32 %v350_v8, %v349_v5  ;;  %s1166_s24 = sld [smem:[#allocation2 + %s316_s19]]  ;;  %s322_s11 = sadd.s32 12, %s1123_s28  ;;  %v361_v29 = vstv %s1141_s2 }
  0x90   : > { %v364_v14 = vstv %s1143_s25  ;;  %s1168_s12 = sld [smem:[#allocation2 + %s318_s14]]  ;;  %v347_v15 = vmul.f32 %v346_v9, %v1154_v6  ;;  %s324_s9 = sadd.s32 13, %s1123_s28 }
  0x91   : > { %v352_v16 = vmul.f32 %v351_v10, %v1154_v6  ;;  %v366_v18 = vstv %s1147_s8  ;;  %s1176_s21 = sld [smem:[#allocation2 + %s320_s23]]  ;;  %s326_s7 = sadd.s32 14, %s1123_s28 }
  0x92   : > { %v369_v19 = vstv %s1149_s29  ;;  %v354_v20 = vmul.f32 %v353_v12, %v347_v15  ;;  %v365_v22 = vmul.f32 %v364_v14, %v347_v15  ;;  %s323_s13 = sld [smem:[#allocation2 + %s322_s11]]  ;;  %s328_s8 = sadd.s32 15, %s1123_s28 }
  0x93   : > { %v356_v21 = vmul.f32 %v355_v13, %v352_v16  ;;  %v367_v23 = vmul.f32 %v366_v18, %v352_v16  ;;  %v370_v24 = vmul.f32 %v369_v19, %v1154_v6  ;;  %s325_s1 = sld [smem:[#allocation2 + %s324_s9]]  ;;  %v372_v30 = vstv %s1156_s6  ;;  %s290_s22 = scalar_lea.vmem [#allocation9], %s616_s0 }
  0x94   : > { %v376_v25 = vstv %s1158_s10  ;;  %s327_s25 = sld [smem:[#allocation2 + %s326_s7]]  ;;  %s420_s30 = sshll.u32 %s290_s22, 4  ;;  %s1195_s30 = int_to_ptr.vmem [resolvable:$true] %s420_s30 }
  0x95   : > { %v357_v26 = vadd.f32 %v356_v21, %v354_v20  ;;  %v368_v27 = vadd.f32 %v367_v23, %v365_v22  ;;  %v377_v28 = vmul.f32 %v376_v25, %v347_v15  ;;  %v378_v31 = vstv %s1166_s24  ;;  %s1188_s29 = sld [smem:[#allocation2 + %s328_s8]]  ;;  %s617_s2 = smul.u32 384, %s892_s18 }
  0x96   : > { %v381_v32 = vstv %s1168_s12  ;;  %v379_v35 = vmul.f32 %v378_v31, %v352_v16  ;;  %s1318_s0 = sshll.u32 %s1104_s5, 3  ;;  %s401_s24 = scalar_lea.sflag [#allocation4], %s1104_s5 }
  0x97   : > { %v360_v33 = vadd.f32 %v359_v17, %v357_v26  ;;  %v371_v34 = vadd.f32 %v370_v24, %v368_v27  ;;  %v382_v36 = vmul.f32 %v381_v32, %v1154_v6  ;;  %v384_v41 = vstv %s1176_s21  ;;  %s1199_s6 = scalar_lea.vmem [#allocation10], %s1318_s0  ;;  %s1206_s14 = scalar_lea.hbm %s1290_s3, %s617_s2 }
  0x98   : > { %v380_v39 = vadd.f32 %v379_v35, %v377_v28  ;;  %v389_v40 = vstv %s323_s13  ;;  %s437_s18 = sshll.u32 %s1199_s6, 4  ;;  %s778_s12 = scalar_lea.vmem %s1195_s30, 384  ;;  %s1209_s18 = int_to_ptr.vmem [resolvable:$true] %s437_s18 }
  0x99   : > { %v362_v37 = vadd.f32 %v361_v29, %v360_v33  ;;  %v373_v38 = vadd.f32 %v372_v30, %v371_v34  ;;  %v390_v42 = vmul.f32 %v389_v40, %v347_v15  ;;  %v391_v43 = vstv %s325_s1  ;;  %p779_p4 = scmp.ne.s32.totalorder %s1195_s30, %s778_s12  ;;  %p1319_p0 = scmp.ne.s32.totalorder %s1306_s26, 0 }
  0x9a   : > { %v383_v44 = vadd.f32 %v382_v36, %v380_v39  ;;  %v392_v45 = vmul.f32 %v391_v43, %v352_v16  ;;  %v394_v46 = vstv %s327_s25  ;;  %s907_s23 = smov [#allocation9]  }
  0x9b   : > { %363 = vst [vmem:[%s290_s22] sm:$0xff] %v362_v37  ;;  %608 = vst [vmem:[%s290_s22 + $0x8] sm:$0xff] %v373_v38  ;;  %v395_v47 = vmul.f32 %v394_v46, %v1154_v6  ;;  %v397_v50 = vstv %s1188_s29  ;;  %p780_p12 = pnand %p779_p4, %p1319_p0  ;;  %s782_s21 = sshll.u32 %s907_s23, 4  ;;  %s783_s21 = int_to_ptr.vmem [resolvable:$false] %s782_s21 }
  0x9c   : > { %v385_v48 = vadd.f32 %v384_v41, %v383_v44  ;;  %v393_v49 = vadd.f32 %v392_v45, %v390_v42  ;;  %s784_s11 = scalar_lea.vmem %s783_s21, 768  ;;  %p785_p10 = scmp.lt.s32.totalorder %s1195_s30, %s783_s21 }
  0x9d   : > { %p781_p2 = pneg %p780_p12  ;;  %p786_p11 = scmp.lt.s32.totalorder %s784_s11, %s778_s12 }
  0x9e   : > { %609 = vst [vmem:[%s290_s22 + $0x10] sm:$0xff] %v385_v48  ;;  %v396_v51 = vadd.f32 %v395_v47, %v393_v49 }
  0x9f   : > { %p787_p5 = por %p786_p11, %p785_p10 }
  0xa1   : > { %p788_p3 = pnand %p787_p5, %p781_p2 }
  0xa3   : > { %791 = shalt.err (!%p788_p3)
}
  0xa4   : > { %s792_s13 = scalar_lea.hbm %s1206_s14, 384  ;;  %s796_s7 = scalar_lea.hbm %s1290_s3, 768 }
  0xa5   : > { %p793_p7 = scmp.ne.s32.totalorder %s1206_s14, %s792_s13  ;;  %p797_p8 = scmp.lt.u32.totalorder %s1206_s14, %s1290_s3 }
  0xa6   : > { %p798_p9 = scmp.lt.u32.totalorder %s796_s7, %s792_s13  ;;  %p800_p4 = scmp.lt.u32.totalorder %s792_s13, %s1206_s14 }
  0xa7   : > { %p794_p1 = pnand %p793_p7, %p1319_p0 }
  0xa8   : > { %p799_p13 = por %p798_p9, %p797_p8 }
  0xa9   : > { %p795_p6 = pneg %p794_p1 }
  0xaa   : > { %p801_p12 = por %p800_p4, %p799_p13 }
  0xac   : > { %p802_p2 = pnand %p801_p12, %p795_p6 }
  0xae   : > { %805 = shalt.err (!%p802_p2)
}
  0xaf   : > { %s908_s29 = smov 128   ;;  %s909_s22 = smov 8   ;;  %v398_v52 = vadd.f32 %v397_v50, %v396_v51 }
  0xb0   : > { %626 = dma.vmem_to_hbm [thread:$0]  (%p1319_p0), %s1195_s30, 384, %s1206_s14, %s401_s24, %s908_s29, %s908_s29, %s909_s22  }
  0xb1   : > { %s1239_s10 = scalar_lea.hbm %s1291_s4, %s1123_s28  ;;  %399 = vst [vmem:[%s1199_s6] sm:$0xff] %v398_v52  ;;  %s406_s19 = scalar_lea.sflag [#allocation11], %s1104_s5 }
  0xb2   : > { %s806_s12 = scalar_lea.vmem %s1209_s18, 128  ;;  %s910_s23 = smov [#allocation10]  }
  0xb3   : > { %p807_p10 = scmp.ne.s32.totalorder %s1209_s18, %s806_s12  ;;  %s810_s21 = sshll.u32 %s910_s23, 4  ;;  %s811_s21 = int_to_ptr.vmem [resolvable:$false] %s810_s21 }
  0xb4   : > { %s812_s11 = scalar_lea.vmem %s811_s21, 256  ;;  %p813_p3 = scmp.lt.s32.totalorder %s1209_s18, %s811_s21 }
  0xb5   : > { %p808_p11 = pnand %p807_p10, %p1319_p0  ;;  %p814_p7 = scmp.lt.s32.totalorder %s812_s11, %s806_s12 }
  0xb7   : > { %p809_p5 = pneg %p808_p11  ;;  %p815_p1 = por %p814_p7, %p813_p3 }
  0xb9   : > { %p816_p6 = pnand %p815_p1, %p809_p5 }
  0xbb   : > { %819 = shalt.err (!%p816_p6)
}
  0xbc   : > { %s820_s5 = scalar_lea.hbm %s1239_s10, 128  ;;  %s824_s6 = scalar_lea.hbm %s1291_s4, 256 }
  0xbd   : > { %p821_p8 = scmp.ne.s32.totalorder %s1239_s10, %s820_s5  ;;  %p825_p4 = scmp.lt.u32.totalorder %s1239_s10, %s1291_s4 }
  0xbe   : > { %p826_p12 = scmp.lt.u32.totalorder %s824_s6, %s820_s5  ;;  %p828_p10 = scmp.lt.u32.totalorder %s820_s5, %s1239_s10 }
  0xbf   : > { %p822_p9 = pnand %p821_p8, %p1319_p0 }
  0xc0   : > { %p827_p2 = por %p826_p12, %p825_p4 }
  0xc1   : > { %p823_p13 = pneg %p822_p9 }
  0xc2   : > { %p829_p11 = por %p828_p10, %p827_p2 }
  0xc4   : > { %p830_p5 = pnand %p829_p11, %p823_p13 }
  0xc6   : > { %833 = shalt.err (!%p830_p5)
}
  0xc7   : > { %627 = dma.vmem_to_hbm [thread:$0]  (%p1319_p0), %s1209_s18, 128, %s1239_s10, %s406_s19  }
  0xc8 PF: > { %s449_s13 = sand.u32 1, %s880_s15   ;;  %p1320_p3 = scmp.ne.s32.totalorder %s1307_s27, 0 }
  0xc9   : > { %p1321_p7 = scmp.ge.s32.totalorder %s900_s20, 2  ;;  %s450_s9 = scalar_lea.sflag [#allocation4], %s449_s13 }
  0xcb   : > { %p642_p1 = pnand %p1321_p7, %p1320_p3 }
  0xcd   : > { %871 = dma.done.wait (!%p642_p1), %s450_s9, 384  }
  0xce   : > { %873 = vsyncadd (!%p642_p1), %s450_s9, 4294966912  ;;  %s459_s1 = scalar_lea.sflag [#allocation11], %s449_s13 }
  0xcf   : > { %875 = dma.done.wait (!%p642_p1), %s459_s1, 128  }
  0xd0   : > { %877 = vsyncadd (!%p642_p1), %s459_s1, 4294967168  ;;  %s28_s20 = sadd.s32 1, %s900_s20   ;;  %s1322_s26 = sld [smem:[#allocation19_spill]] }
  0xd1   : > { %p25_p6 = scmp.ge.s32.totalorder %s28_s20, 4   ;;  %s1323_s18 = sld [smem:[#allocation17_spill]] }
  0xd2   : > { %s1324_s19 = sld [smem:[#allocation18_spill]]  ;;  %s1325_s15 = smov %s884_s16 }
  0xd3   : > { %s1326_s16 = smov %s888_s17  ;;  %27 = sbr.rel (!%p25_p6) target bundleno = 15 (0xf), region = 115 }
  0xd6   : > { %s1327_s17 = smov %s1322_s26 }
  0xda   :  { %464 = vsyncpa [#allocation3], 1 }
  0xdb   :  { %466 = vsyncpa [#allocation3 + $0x1], 1 }
  0xdc   :  { %467 = vsyncpa [#allocation8], 1 }
  0xdd   :  { %469 = vsyncpa [#allocation8 + $0x1], 1 }
  0xde   :  { %470 = vsyncpa [#allocation4], 1 }
  0xdf   :  { %472 = vsyncpa [#allocation4 + $0x1], 1 }
  0xe0   :  { %473 = vsyncpa [#allocation11], 1 }
  0xe1   :  { %475 = vsyncpa [#allocation11 + $0x1], 1 }
  0xe2   :  { %476 = vsyncpa [#allocation5], 1 }
  0xe3   :  { %478 = vsyncpa [#allocation5 + $0x1], 1 }

</bundles_post_ra>
